<compile_context>
chip_gen: v7x
topology: tpu7x:2x2x1
jax: 0.10.0
libtpu: 0.0.40
codegen_flags: <defaults>
</compile_context>

<pallas_src>
import jax
import jax.numpy as jnp
from jax.experimental import pallas as pl
from jax.experimental.pallas import tpu as pltpu


def _round_up(x, m):
    return (x + m - 1) // m * m


def _device_kind():
    try:
        return jax.devices()[0].device_kind.lower()
    except Exception:
        return ""


def _normalize_head(emb, w2_ref, b2_ref, pred_ref, emb_ref):
    """Shared epilogue: L2-normalize (EUP rsqrt) + relu-matmul + sigmoid."""
    # F.normalize(emb, p=2, dim=1) = emb / max(||emb||, 1e-12); clamping the
    # squared norm at 1e-24 is equivalent (differs only at denormal norms).
    sq = jnp.sum(emb * emb, axis=1, keepdims=True)          # (TB, 1)
    inv = jax.lax.rsqrt(jnp.maximum(sq, 1e-24))
    emb_ref[...] = (emb * inv).astype(emb_ref.dtype)

    # fc_logits(relu(emb)) -> sigmoid.  MXU gets compute-dtype inputs, f32
    # accumulation; the sigmoid epilogue stays in f32.
    relu = jnp.maximum(emb, 0.0).astype(w2_ref.dtype)
    logits = jnp.dot(relu, w2_ref[...],
                     preferred_element_type=jnp.float32) + b2_ref[...]
    pred_ref[...] = jax.nn.sigmoid(logits).astype(pred_ref.dtype)


def concat_cls_kernel_fused(vid_ref, cls_ref, w1_ref, b1_ref, w2_ref, b2_ref,
                            pred_ref, emb_ref, feat_ref):
    """Single K = D_vid + D_title fc_hidden matmul (v6e/v7x: full MXU depth)."""
    mxu = w1_ref.dtype
    d_vid = vid_ref.shape[-1]
    feat_ref[:, :d_vid] = vid_ref[...].astype(mxu)           # cheap VPU copies
    feat_ref[:, d_vid:] = cls_ref[...].astype(mxu)
    emb = (jnp.dot(feat_ref[...], w1_ref[...],
                   preferred_element_type=jnp.float32) + b1_ref[...])
    _normalize_head(emb, w2_ref, b2_ref, pred_ref, emb_ref)


def concat_cls_kernel_split(vid_ref, cls_ref, w1v_ref, w1t_ref, b1_ref,
                            w2_ref, b2_ref, pred_ref, emb_ref):
    """Split K=128 fc_hidden matmuls (v5e: already matches the 4x128^2 MXU)."""
    mxu = w1v_ref.dtype
    emb = (jnp.dot(vid_ref[...].astype(mxu), w1v_ref[...],
                   preferred_element_type=jnp.float32)
           + jnp.dot(cls_ref[...].astype(mxu), w1t_ref[...],
                     preferred_element_type=jnp.float32)
           + b1_ref[...])
    _normalize_head(emb, w2_ref, b2_ref, pred_ref, emb_ref)


def concat_cls_forward(video_feature, title_feature, w1, b1, w2, b2,
                       *, block_b=1024, compute_dtype=jnp.bfloat16,
                       emb_dtype=jnp.bfloat16, pred_dtype=jnp.float32):
    """video_feature: (B, D_vid); title_feature: (B, S, D_title).

    Weights are stored pre-transposed: w1 (D_vid + D_title, H), w2 (H, C)
    (equivalent to PyTorch's x @ W.T with W of shape (out, in)).
    Returns ((pred, normed_embedding), None), matching the label=None path.

    Precision contract: MXU inputs are rounded to `compute_dtype` (f32
    accumulation; f32 normalize/sigmoid epilogue) and the normalized embedding
    is stored as `emb_dtype`.  Pass float32 for both for full-f32 parity with
    the original PyTorch module.
    """
    B, D_vid = video_feature.shape
    _, S, D_title = title_feature.shape
    D_in = D_vid + D_title
    H = w1.shape[1]
    C = w2.shape[1]
    assert w1.shape[0] == D_in

    MiB = 1 << 20
    kind = _device_kind()
    is_v5 = "v5" in kind
    is_v7 = "v7" in kind
    if is_v7:                                           # 64 MiB physical VMEM
        vmem_limit, vmem_budget = 56 * MiB, 44 * MiB
    elif any(v in kind for v in ("v4", "v5", "v6")):    # 128 MiB physical
        vmem_limit, vmem_budget = 100 * MiB, 80 * MiB
    else:                                               # unknown: keep default scoped limit
        vmem_limit, vmem_budget = None, 12 * MiB

    # Fuse fc_hidden into one K = D_in matmul on v6e/v7x (256-deep MXU); keep
    # the split K=128 form on v5e or when D_vid is not lane-aligned.
    fuse_k = (not is_v5) and (D_vid % 128 == 0)

    # ---- parameters: resident across the whole grid, cast once ----
    b1_2d = b1.reshape(1, H).astype(jnp.float32)
    C_pad = _round_up(C, 128)                           # lane-dense pred stores
    if C_pad == C:
        w2_p = w2.astype(compute_dtype)
        b2_p = b2.reshape(1, C).astype(jnp.float32)
    else:
        w2_p = jnp.zeros((H, C_pad), compute_dtype).at[:, :C].set(
            w2.astype(compute_dtype))
        b2_p = jnp.zeros((1, C_pad), jnp.float32).at[:, :C].set(
            b2.astype(jnp.float32).reshape(1, C))
    # TODO(synk): for a very large NUM_CLASSES tag head, add a class-tile grid
    # axis for w2/b2/pred instead of holding (H, C_pad) + (tb, C_pad) resident.

    # ---- activations: no padding, no HBM copies ----
    vid = video_feature
    if S == 1:
        title_src = title_feature.reshape(B, D_title)
    elif D_title % 128 == 0:
        # CLS token straight from HBM: flatten (free, contiguous) and let the
        # BlockSpec read only columns [0, D_title) of each row tile.
        title_src = title_feature.reshape(B, S * D_title)
    else:
        # Lane-alignment fallback: materialize the (small) CLS slice.
        title_src = title_feature[:, 0]

    # ---- batch tile: multiple of 8, VMEM-budgeted, >=4 tiles on v7x ----
    cdt_isz = jnp.dtype(compute_dtype).itemsize

    def vmem_needed(tb):
        acts = 2 * tb * (D_vid * video_feature.dtype.itemsize
                         + D_title * title_feature.dtype.itemsize)
        outs = 2 * tb * (C_pad * jnp.dtype(pred_dtype).itemsize
                         + H * jnp.dtype(emb_dtype).itemsize)
        # Resident params are still double-buffered by Pallas; count both
        # copies (pl.Buffered(1) could reclaim one, left off for portability).
        weights = 2 * (D_in * H + H * C_pad) * cdt_isz
        biases = 2 * (H + C_pad) * 4
        scratch = tb * D_in * cdt_isz if fuse_k else 0
        return acts + outs + weights + biases + scratch

    if B <= 8:
        tb = B                                          # full-dim block is always legal
    else:
        tb = max(8, min(block_b, _round_up(B, 8)))
        if is_v7:                                       # keep both TensorCores busy
            tb = min(tb, max(8, _round_up(-(-B // 4), 8)))
        while tb > 8 and vmem_needed(tb) > vmem_budget:
            tb = max(8, _round_up(tb // 2, 8))
        if tb >= B:
            tb = B
    nb = -(-B // tb)                                    # ragged last block is masked

    def row_spec(cols):
        return pl.BlockSpec((tb, cols), lambda i: (i, 0))

    def full_spec(shape):
        # Resident parameter block: index never changes -> never re-DMA'd.
        return pl.BlockSpec(shape, lambda i: (0, 0))

    if fuse_k:
        kernel = concat_cls_kernel_fused
        params = (w1.astype(compute_dtype), b1_2d, w2_p, b2_p)
        param_specs = [full_spec((D_in, H)), full_spec((1, H)),
                       full_spec((H, C_pad)), full_spec((1, C_pad))]
        scratch_shapes = [pltpu.VMEM((tb, D_in), compute_dtype)]
    else:
        kernel = concat_cls_kernel_split
        params = (w1[:D_vid].astype(compute_dtype),
                  w1[D_vid:].astype(compute_dtype), b1_2d, w2_p, b2_p)
        param_specs = [full_spec((D_vid, H)), full_spec((D_title, H)),
                       full_spec((1, H)),
                       full_spec((H, C_pad)), full_spec((1, C_pad))]
        scratch_shapes = []

    cp_kwargs = dict(dimension_semantics=("parallel",))
    if vmem_limit is not None:
        cp_kwargs["vmem_limit_bytes"] = int(vmem_limit)

    pred_p, normed = pl.pallas_call(
        kernel,
        out_shape=(
            jax.ShapeDtypeStruct((B, C_pad), pred_dtype),
            jax.ShapeDtypeStruct((B, H), emb_dtype),
        ),
        grid=(nb,),
        in_specs=[row_spec(D_vid), row_spec(D_title)] + param_specs,
        out_specs=(row_spec(C_pad), row_spec(H)),
        scratch_shapes=scratch_shapes,
        compiler_params=pltpu.CompilerParams(**cp_kwargs),
    )(vid, title_src, *params)

    pred = pred_p if C_pad == C else pred_p[:, :C]
    # TODO(synk): loss path (pluggable loss_func + LOSS.SCALE) not implemented;
    # forward matches the label=None branch (loss=None).
    return (pred, normed), None


if __name__ == "__main__":
    # Small synthetic config consistent with the module:
    #   INPUT_SIZE = D_vid + D_title, HIDDEN_SIZE, NUM_CLASSES
    B, S = 20, 4
    D_VID, D_TITLE = 128, 128
    INPUT_SIZE = D_VID + D_TITLE          # 256
    HIDDEN_SIZE = 256
    NUM_CLASSES = 32

    key = jax.random.PRNGKey(0)
    k_vid, k_tit, k_w1, k_b1, k_w2, k_b2 = jax.random.split(key, 6)

    video_feature = jax.random.normal(k_vid, (B, D_VID), dtype=jnp.float32)
    title_feature = jax.random.normal(k_tit, (B, S, D_TITLE), dtype=jnp.float32)

    # Deterministic parameter init (PyTorch Linear-style uniform bounds),
    # stored as (in_features, out_features).
    bound1 = 1.0 / (INPUT_SIZE ** 0.5)
    w1 = jax.random.uniform(k_w1, (INPUT_SIZE, HIDDEN_SIZE),
                            minval=-bound1, maxval=bound1, dtype=jnp.float32)
    b1 = jax.random.uniform(k_b1, (HIDDEN_SIZE,),
                            minval=-bound1, maxval=bound1, dtype=jnp.float32)
    bound2 = 1.0 / (HIDDEN_SIZE ** 0.5)
    w2 = jax.random.uniform(k_w2, (HIDDEN_SIZE, NUM_CLASSES),
                            minval=-bound2, maxval=bound2, dtype=jnp.float32)
    b2 = jax.random.uniform(k_b2, (NUM_CLASSES,),
                            minval=-bound2, maxval=bound2, dtype=jnp.float32)

    # block_b=8 forces a multi-tile grid with a ragged last block
    # (B=20, tb=8 -> 3 tiles, last tile has 4 valid rows) to exercise the
    # pad-free masked path on any chip.
    (pred, normed_emb), loss = concat_cls_forward(
        video_feature, title_feature, w1, b1, w2, b2, block_b=8)
    jax.block_until_ready((pred, normed_emb))

    # Pure-JAX reference with the same bf16 rounding of MXU inputs
    # (f32 accumulation), so tolerances stay tight.
    dt = jnp.bfloat16
    feat = jnp.concatenate([video_feature, title_feature[:, 0]], axis=1)
    feat_q = feat.astype(dt).astype(jnp.float32)
    w1_q = w1.astype(dt).astype(jnp.float32)
    emb_r = feat_q @ w1_q + b1
    normed_r = emb_r / jnp.maximum(
        jnp.linalg.norm(emb_r, axis=1, keepdims=True), 1e-12)
    relu_q = jnp.maximum(emb_r, 0.0).astype(dt).astype(jnp.float32)
    w2_q = w2.astype(dt).astype(jnp.float32)
    pred_r = jax.nn.sigmoid(relu_q @ w2_q + b2)

    assert pred.shape == (B, NUM_CLASSES)
    assert normed_emb.shape == (B, HIDDEN_SIZE)
    assert loss is None
    assert jnp.allclose(pred, pred_r, atol=5e-4, rtol=5e-4), \
        float(jnp.max(jnp.abs(pred - pred_r)))
    ne = normed_emb.astype(jnp.float32)                   # emb stored as bf16
    assert jnp.allclose(ne, normed_r, atol=1e-2, rtol=5e-2), \
        float(jnp.max(jnp.abs(ne - normed_r)))
    print("KERNEL_OK")
</pallas_src>

<mosaic_0001>
module attributes {stable_mosaic.version = 11 : i64} {
  func.func @concat_cls_kernel_fused(%arg0: i32, %arg1: memref<8x128xf32, #tpu.memory_space<vmem>>, %arg2: memref<8x128xf32, #tpu.memory_space<vmem>>, %arg3: memref<256x256xbf16, #tpu.memory_space<vmem>>, %arg4: memref<1x256xf32, #tpu.memory_space<vmem>>, %arg5: memref<256x128xbf16, #tpu.memory_space<vmem>>, %arg6: memref<1x128xf32, #tpu.memory_space<vmem>>, %arg7: memref<8x128xf32, #tpu.memory_space<vmem>>, %arg8: memref<8x256xbf16, #tpu.memory_space<vmem>>, %arg9: memref<8x256xbf16, #tpu.memory_space<vmem>>) attributes {dimension_semantics = [#tpu.dimension_semantics<parallel>], iteration_bounds = array<i64: 3>, scalar_prefetch = 0 : i64, scratch_operands = 1 : i64, tpu.core_type = #tpu.core_type<tc>, window_params = [{transform_indices = @transform_0, window_bounds = array<i64: 8, 128>}, {transform_indices = @transform_1, window_bounds = array<i64: 8, 128>}, {pipeline_mode = #tpu.pipeline_mode<synchronous>, transform_indices = @transform_2, window_bounds = array<i64: 256, 256>}, {pipeline_mode = #tpu.pipeline_mode<synchronous>, transform_indices = @transform_3, window_bounds = array<i64: 1, 256>}, {pipeline_mode = #tpu.pipeline_mode<synchronous>, transform_indices = @transform_4, window_bounds = array<i64: 256, 128>}, {pipeline_mode = #tpu.pipeline_mode<synchronous>, transform_indices = @transform_5, window_bounds = array<i64: 1, 128>}, {transform_indices = @transform_6, window_bounds = array<i64: 8, 128>}, {transform_indices = @transform_7, window_bounds = array<i64: 8, 256>}]} {
    %c0 = arith.constant 0 : index
    %c0_0 = arith.constant 0 : index
    %0 = vector.load %arg1[%c0, %c0_0] : memref<8x128xf32, #tpu.memory_space<vmem>>, vector<8x128xf32>
    %1 = arith.truncf %0 : vector<8x128xf32> to vector<8x128xbf16>
    %c0_1 = arith.constant 0 : index
    %c0_2 = arith.constant 0 : index
    %2 = vector.load %arg9[%c0_1, %c0_2] : memref<8x256xbf16, #tpu.memory_space<vmem>>, vector<8x128xbf16>
    tpu.vector_store %arg9[%c0_1, %c0_2], %1 {strides = array<i32>} : memref<8x256xbf16, #tpu.memory_space<vmem>>, vector<8x128xbf16>,
    %c0_3 = arith.constant 0 : index
    %c0_4 = arith.constant 0 : index
    %3 = vector.load %arg2[%c0_3, %c0_4] : memref<8x128xf32, #tpu.memory_space<vmem>>, vector<8x128xf32>
    %4 = arith.truncf %3 : vector<8x128xf32> to vector<8x128xbf16>
    %c0_5 = arith.constant 0 : index
    %c128 = arith.constant 128 : index
    %5 = vector.load %arg9[%c0_5, %c128] : memref<8x256xbf16, #tpu.memory_space<vmem>>, vector<8x128xbf16>
    tpu.vector_store %arg9[%c0_5, %c128], %4 {strides = array<i32>} : memref<8x256xbf16, #tpu.memory_space<vmem>>, vector<8x128xbf16>,
    %c0_6 = arith.constant 0 : index
    %c0_7 = arith.constant 0 : index
    %6 = vector.load %arg9[%c0_6, %c0_7] : memref<8x256xbf16, #tpu.memory_space<vmem>>, vector<8x256xbf16>
    %c0_8 = arith.constant 0 : index
    %c0_9 = arith.constant 0 : index
    %7 = vector.load %arg3[%c0_8, %c0_9] : memref<256x256xbf16, #tpu.memory_space<vmem>>, vector<256x256xbf16>
    %cst = arith.constant dense<0.000000e+00> : vector<8x256xf32>
    %8 = tpu.matmul %6, %7, %cst {dimension_numbers = #tpu.dot_dimension_numbers<[1], [0], [0], [1], [0, 0, 1, 1], [], []>} : vector<8x256xbf16>, vector<256x256xbf16>, vector<8x256xf32> -> vector<8x256xf32>
    %c0_10 = arith.constant 0 : index
    %c0_11 = arith.constant 0 : index
    %9 = vector.load %arg4[%c0_10, %c0_11] : memref<1x256xf32, #tpu.memory_space<vmem>>, vector<1x256xf32>
    %10 = vector.broadcast %9 : vector<1x256xf32> to vector<8x256xf32>
    %11 = arith.addf %8, %10 : vector<8x256xf32>
    %12 = arith.mulf %11, %11 : vector<8x256xf32>
    %cst_12 = arith.constant dense<0.000000e+00> : vector<8xf32>
    %13 = vector.multi_reduction <add>, %12, %cst_12 [1] : vector<8x256xf32> to vector<8xf32>
    %14 = vector.shape_cast %13 : vector<8xf32> to vector<8x1xf32>
    %cst_13 = arith.constant 1.000000e-24 : f32
    %15 = vector.broadcast %cst_13 : f32 to vector<8x1xf32>
    %16 = arith.maximumf %14, %15 : vector<8x1xf32>
    %17 = math.rsqrt %16 : vector<8x1xf32>
    %18 = vector.broadcast %17 : vector<8x1xf32> to vector<8x256xf32>
    %19 = arith.mulf %11, %18 : vector<8x256xf32>
    %20 = arith.truncf %19 : vector<8x256xf32> to vector<8x256xbf16>
    %c0_14 = arith.constant 0 : index
    %c0_15 = arith.constant 0 : index
    %21 = vector.load %arg8[%c0_14, %c0_15] : memref<8x256xbf16, #tpu.memory_space<vmem>>, vector<8x256xbf16>
    tpu.vector_store %arg8[%c0_14, %c0_15], %20 {strides = array<i32>} : memref<8x256xbf16, #tpu.memory_space<vmem>>, vector<8x256xbf16>,
    %cst_16 = arith.constant 0.000000e+00 : f32
    %22 = vector.broadcast %cst_16 : f32 to vector<8x256xf32>
    %23 = arith.maximumf %11, %22 : vector<8x256xf32>
    %24 = arith.truncf %23 : vector<8x256xf32> to vector<8x256xbf16>
    %c0_17 = arith.constant 0 : index
    %c0_18 = arith.constant 0 : index
    %25 = vector.load %arg5[%c0_17, %c0_18] : memref<256x128xbf16, #tpu.memory_space<vmem>>, vector<256x128xbf16>
    %cst_19 = arith.constant dense<0.000000e+00> : vector<8x128xf32>
    %26 = tpu.matmul %24, %25, %cst_19 {dimension_numbers = #tpu.dot_dimension_numbers<[1], [0], [0], [1], [0, 0, 1, 1], [], []>} : vector<8x256xbf16>, vector<256x128xbf16>, vector<8x128xf32> -> vector<8x128xf32>
    %c0_20 = arith.constant 0 : index
    %c0_21 = arith.constant 0 : index
    %27 = vector.load %arg6[%c0_20, %c0_21] : memref<1x128xf32, #tpu.memory_space<vmem>>, vector<1x128xf32>
    %28 = vector.broadcast %27 : vector<1x128xf32> to vector<8x128xf32>
    %29 = arith.addf %26, %28 : vector<8x128xf32>
    %30 = arith.negf %29 : vector<8x128xf32>
    %31 = math.exp %30 : vector<8x128xf32>
    %cst_22 = arith.constant 1.000000e+00 : f32
    %32 = vector.broadcast %cst_22 : f32 to vector<8x128xf32>
    %33 = arith.addf %32, %31 : vector<8x128xf32>
    %34 = arith.divf %32, %33 : vector<8x128xf32>
    %c0_23 = arith.constant 0 : index
    %c0_24 = arith.constant 0 : index
    %35 = vector.load %arg7[%c0_23, %c0_24] : memref<8x128xf32, #tpu.memory_space<vmem>>, vector<8x128xf32>
    tpu.vector_store %arg7[%c0_23, %c0_24], %34 {strides = array<i32>} : memref<8x128xf32, #tpu.memory_space<vmem>>, vector<8x128xf32>,
    return
  }
  func.func @transform_0(%arg0: i32) -> (i32, i32) {
    %c0_i32 = arith.constant 0 : i32
    %c0_i32_0 = arith.constant 0 : i32
    return %arg0, %c0_i32 : i32, i32
  }
  func.func @transform_1(%arg0: i32) -> (i32, i32) {
    %c0_i32 = arith.constant 0 : i32
    %c0_i32_0 = arith.constant 0 : i32
    return %arg0, %c0_i32 : i32, i32
  }
  func.func @transform_2(%arg0: i32) -> (i32, i32) {
    %c0_i32 = arith.constant 0 : i32
    %c0_i32_0 = arith.constant 0 : i32
    %c0_i32_1 = arith.constant 0 : i32
    return %c0_i32, %c0_i32_0 : i32, i32
  }
  func.func @transform_3(%arg0: i32) -> (i32, i32) {
    %c0_i32 = arith.constant 0 : i32
    %c0_i32_0 = arith.constant 0 : i32
    %c0_i32_1 = arith.constant 0 : i32
    return %c0_i32, %c0_i32_0 : i32, i32
  }
  func.func @transform_4(%arg0: i32) -> (i32, i32) {
    %c0_i32 = arith.constant 0 : i32
    %c0_i32_0 = arith.constant 0 : i32
    %c0_i32_1 = arith.constant 0 : i32
    return %c0_i32, %c0_i32_0 : i32, i32
  }
  func.func @transform_5(%arg0: i32) -> (i32, i32) {
    %c0_i32 = arith.constant 0 : i32
    %c0_i32_0 = arith.constant 0 : i32
    %c0_i32_1 = arith.constant 0 : i32
    return %c0_i32, %c0_i32_0 : i32, i32
  }
  func.func @transform_6(%arg0: i32) -> (i32, i32) {
    %c0_i32 = arith.constant 0 : i32
    %c0_i32_0 = arith.constant 0 : i32
    return %arg0, %c0_i32 : i32, i32
  }
  func.func @transform_7(%arg0: i32) -> (i32, i32) {
    %c0_i32 = arith.constant 0 : i32
    %c0_i32_0 = arith.constant 0 : i32
    return %arg0, %c0_i32 : i32, i32
  }
}

</mosaic_0001>

<bundles_post_ra>
// kernel: tpu_custom_call.1
= control target key start
LH: loop header
LB: loop body
LE: loop exit
PB: predicated region body
PF: predicated region fallthrough
CT: control target
= control target key end

     0   :  { %s1861_s0 = inlined_call_operand.hbm [shape: f32[20,128], index: 0, kind: input, shape index: {}]   ;;  %s1862_s1 = inlined_call_operand.hbm [shape: f32[20,512], index: 1, kind: input, shape index: {}]   ;;  %s1863_s2 = inlined_call_operand.hbm [shape: bf16[256,256], index: 2, kind: input, shape index: {}]   ;;  %s1864_s3 = inlined_call_operand.vmem [shape: f32[1,256], index: 3, kind: input, shape index: {}]   ;;  %s1865_s4 = inlined_call_operand.hbm [shape: bf16[256,128], index: 4, kind: input, shape index: {}]   ;;  %s1866_s5 = inlined_call_operand.vmem [shape: f32[1,128], index: 5, kind: input, shape index: {}]   ;;  %s1867_s6 = inlined_call_operand.hbm [shape: f32[20,128], index: 6, kind: output, shape index: {0}]   ;;  %s1868_s7 = inlined_call_operand.hbm [shape: bf16[20,256], index: 7, kind: output, shape index: {1}]  }
   0x1   :  { %1873 = sst [smem:[#allocation20_spill]] %s1861_s0 }
   0x2   :  { %1874 = sst [smem:[#allocation21_spill]] %s1863_s2 }
   0x3   :  { %13 = vsyncpa [#allocation4], 0 }
   0x4   :  { %15 = vsyncpa [#allocation4 + $0x1], 0 }
   0x5   :  { %16 = vsyncpa [#allocation7], 0 }
   0x6   :  { %18 = vsyncpa [#allocation7 + $0x1], 0 }
   0x7   :  { %19 = vsyncpa [#allocation10], 0 }
   0x8   :  { %20 = vsyncpa [#allocation5], 0 }
   0x9   :  { %22 = vsyncpa [#allocation5 + $0x1], 0 }
   0xa   :  { %23 = vsyncpa [#allocation13], 0 }
   0xb   :  { %25 = vsyncpa [#allocation13 + $0x1], 0  ;;  %s1551_s24 = smov 0   ;;  %s1553_s25 = smov 0  }
   0xc   :  { %s1555_s26 = smov 0   ;;  %s1557_s27 = smov 0  }
   0xd LB: > { %s1572_s28 = sadd.s32 4294967295, %s1499_s27   ;;  %s1013_s29 = sadd.s32 4294967294, %s1499_s27   ;;  %s1499_s27 = sphi %s1557_s27, %s1896_s27   ;;  %s1495_s26 = sphi %s1555_s26, %s1895_s26   ;;  %s1491_s25 = sphi %s1553_s25, %s1894_s25   ;;  %s1487_s24 = sphi %s1551_s24, %s1893_s24  }
   0xe   : > { %p51_p0 = scmp.ne.s32.totalorder %s1491_s25, %s1487_s24  ;;  %p1869_p1 = scmp.eq.s32.totalorder %s1572_s28, 0 }
   0xf   : > { %p191_p3 = scmp.eq.s32.totalorder %s1013_s29, 2  ;;  %p1014_p5 = scmp.ge.s32.totalorder %s1499_s27, 1 }
  0x10   : > { %p1581_p4 = por %p1869_p1, %p51_p0  ;;  %p224_p7 = scmp.lt.s32.totalorder %s1499_s27, 4 }
  0x11   : > { %p1586_p6 = por %p191_p3, %p51_p0  ;;  %s1501_s10 = smov [#allocation8]  }
  0x12   : > { %s1875_s30 = scalar_select %p1581_p4, 1, 0 }
  0x13   : > { %s1876_s8 = scalar_select %p1586_p6, 1, 0 }
  0x14   : > { %p1591_p8 = pnand %p1014_p5, %p224_p7  ;;  %s236_s11 = sshll.u32 %s1501_s10, 4  ;;  %s237_s11 = int_to_ptr.vmem [resolvable:$true] %s236_s11 }
  0x15   : > { %s1502_s13 = smov [#allocation9]   ;;  %s1879_s2 = sld [smem:[#allocation21_spill]] }
  0x16   : > { %s1877_s9 = scalar_select %p1591_p8, 1, 0 }
  0x17   : > { %p1138_p9 = pneg %p1591_p8  ;;  %s252_s14 = sshll.u32 %s1502_s13, 4  ;;  %s1603_s14 = int_to_ptr.vmem [resolvable:$true] %s252_s14 }
  0x19   : > { %p1599_p10 = pnand %p1138_p9, %p1869_p1 }
  0x1b   : > { %s1273_s17 = scalar_lea.hbm %s1879_s2, 4096  ;;  %p1275_p12 = pneg %p1599_p10 }
  0x1c   : > { %p1274_p11 = scmp.ne.s32.totalorder %s1879_s2, %s1273_s17  ;;  %p1280_p3 = scmp.lt.u32.totalorder %s1273_s17, %s1879_s2 }
  0x1e   : > { %p1276_p13 = pnand %p1275_p12, %p1274_p11 }
  0x20   : > { %p1277_p0 = pneg %p1276_p13 }
  0x22   : > { %p1282_p5 = pnand %p1280_p3, %p1277_p0 }
  0x24   : > { %1285 = shalt.err (!%p1282_p5)
}
  0x25   : > { %s1286_s22 = scalar_lea.vmem %s237_s11, 4096  ;;  %p1294_p2 = scmp.lt.s32.totalorder %s237_s11, %s237_s11 }
  0x26   : > { %p1287_p7 = scmp.ne.s32.totalorder %s237_s11, %s1286_s22  ;;  %p1295_p6 = scmp.lt.s32.totalorder %s1286_s22, %s1286_s22 }
  0x28   : > { %p1289_p9 = pnand %p1287_p7, %p1275_p12  ;;  %p1296_p4 = por %p1295_p6, %p1294_p2 }
  0x2a   : > { %p1290_p1 = pneg %p1289_p9 }
  0x2c   : > { %p1297_p8 = pnand %p1296_p4, %p1290_p1 }
  0x2e   : > { %1300 = shalt.err (!%p1297_p8)
}
  0x2f   : > { %s1503_s23 = smov 128   ;;  %s1504_s29 = smov 8  }
  0x30   : > { %1141 = dma.hbm_to_vmem [thread:$0]  (!%p1599_p10), %s1879_s2, 4096, %s237_s11, [#allocation7], %s1503_s23, %s1503_s23, %s1504_s29  }
  0x31   : > { %s1301_s17 = scalar_lea.hbm %s1865_s4, 2048 }
  0x32   : > { %p1302_p11 = scmp.ne.s32.totalorder %s1865_s4, %s1301_s17  ;;  %p1308_p4 = scmp.lt.u32.totalorder %s1301_s17, %s1865_s4 }
  0x34   : > { %p1304_p1 = pnand %p1302_p11, %p1275_p12 }
  0x36   : > { %p1305_p2 = pneg %p1304_p1 }
  0x38   : > { %p1310_p6 = pnand %p1308_p4, %p1305_p2 }
  0x3a   : > { %1313 = shalt.err (!%p1310_p6)
}
  0x3b   : > { %s1314_s11 = scalar_lea.vmem %s1603_s14, 2048  ;;  %p1322_p3 = scmp.lt.s32.totalorder %s1603_s14, %s1603_s14 }
  0x3c   : > { %p1315_p8 = scmp.ne.s32.totalorder %s1603_s14, %s1314_s11  ;;  %p1323_p5 = scmp.lt.s32.totalorder %s1314_s11, %s1314_s11 }
  0x3e   : > { %p1317_p13 = pnand %p1315_p8, %p1275_p12  ;;  %p1324_p7 = por %p1323_p5, %p1322_p3 }
  0x40   : > { %p1318_p0 = pneg %p1317_p13 }
  0x42   : > { %p1325_p9 = pnand %p1324_p7, %p1318_p0 }
  0x44   : > { %1328 = shalt.err (!%p1325_p9)
}
  0x45   : > { %s1505_s22 = smov 64   ;;  %s1506_s23 = smov 4  }
  0x46   : > { %1144 = dma.hbm_to_vmem [thread:$0]  (!%p1599_p10), %s1865_s4, 2048, %s1603_s14, [#allocation10], %s1505_s22, %s1505_s22, %s1506_s23  }
  0x47   : > { %s1653_s13 = sadd.s32 1, %s1499_s27   ;;  %s38_s16 = sadd.s32 1, %s1495_s26 }
  0x48   : > { %s35_s15 = ssub.s32 %s1499_s27, %s1653_s13  ;;  %p45_p11 = scmp.ne.s32.totalorder %s1495_s26, %s1491_s25 }
  0x49   : > { %p36_p12 = scmp.eq.s32.totalorder %s35_s15, 0  ;;  %p46_p1 = scmp.eq.s32.totalorder %s1499_s27, 0 }
  0x4a   : > { %p1880_p4 = scmp.eq.s32.totalorder %s1572_s28, 2  ;;  %p1161_p8 = scmp.lt.s32.totalorder %s1499_s27, 3 }
  0x4b   : > { %s1662_s17 = scalar_select %p36_p12, %s1495_s26, %s38_s16  }
  0x4c   : > { %p47_p2 = por %p46_p1, %p45_p11  ;;  %p1666_p6 = por %p1880_p4, %p45_p11 }
  0x4d   : > { %s269_s12 = sand.u32 1, %s1495_s26   ;;  %s1019_s19 = sshll.u32 %s1499_s27, 7 }
  0x4e   : > { %s1881_s18 = scalar_select %p1666_p6, 1, 0 }
  0x4f   : > { %s1672_s14 = sshll.u32 %s269_s12, 3  ;;  %s1882_s0 = sld [smem:[#allocation20_spill]] }
  0x50   : > { %s273_s22 = scalar_lea.vmem [#allocation3], %s1672_s14  ;;  %p1683_p10 = pnand %p1161_p8, %p47_p2 }
  0x51   : > { %s280_s23 = sshll.u32 %s273_s22, 4  ;;  %s270_s15 = scalar_lea.sflag [#allocation4], %s269_s12  ;;  %s1681_s23 = int_to_ptr.vmem [resolvable:$true] %s280_s23 }
  0x52   : > { %p1331_p0 = pneg %p1683_p10 }
  0x55   : > { %s1678_s11 = scalar_lea.hbm %s1882_s0, %s1019_s19  ;;  %s1334_s21 = scalar_lea.hbm %s1882_s0, 384 }
  0x56   : > { %s1329_s16 = scalar_lea.hbm %s1678_s11, 128  ;;  %p1335_p7 = scmp.lt.u32.totalorder %s1678_s11, %s1882_s0 }
  0x57   : > { %p1330_p13 = scmp.ne.s32.totalorder %s1678_s11, %s1329_s16  ;;  %p1336_p9 = scmp.lt.u32.totalorder %s1334_s21, %s1329_s16 }
  0x58   : > { %p1338_p11 = scmp.lt.u32.totalorder %s1329_s16, %s1678_s11 }
  0x59   : > { %p1332_p3 = pnand %p1331_p0, %p1330_p13  ;;  %p1337_p12 = por %p1336_p9, %p1335_p7 }
  0x5b   : > { %p1333_p5 = pneg %p1332_p3  ;;  %p1339_p1 = por %p1338_p11, %p1337_p12 }
  0x5d   : > { %p1340_p2 = pnand %p1339_p1, %p1333_p5 }
  0x5f   : > { %1343 = shalt.err (!%p1340_p2)
}
  0x60   : > { %s1344_s12 = scalar_lea.vmem %s1681_s23, 128  ;;  %s1507_s19 = smov [#allocation3]  }
  0x61   : > { %p1345_p4 = scmp.ne.s32.totalorder %s1681_s23, %s1344_s12  ;;  %s1349_s20 = sshll.u32 %s1507_s19, 4  ;;  %s1350_s20 = int_to_ptr.vmem [resolvable:$false] %s1349_s20 }
  0x62   : > { %s1351_s2 = scalar_lea.vmem %s1350_s20, 256  ;;  %p1352_p3 = scmp.lt.s32.totalorder %s1681_s23, %s1350_s20 }
  0x63   : > { %p1347_p8 = pnand %p1345_p4, %p1331_p0  ;;  %p1353_p7 = scmp.lt.s32.totalorder %s1351_s2, %s1344_s12 }
  0x65   : > { %p1348_p13 = pneg %p1347_p8  ;;  %p1354_p9 = por %p1353_p7, %p1352_p3 }
  0x67   : > { %p1355_p12 = pnand %p1354_p9, %p1348_p13 }
  0x69   : > { %1358 = shalt.err (!%p1355_p12)
}
  0x6a   : > { %1148 = dma.hbm_to_vmem [thread:$0]  (!%p1683_p10), %s1678_s11, 128, %s1681_s23, %s270_s15  }
  0x6b   : > { %s1090_s16 = sshll.u32 %s1499_s27, 9  ;;  %s291_s21 = scalar_lea.vmem [#allocation6], %s1672_s14 }
  0x6c   : > { %s299_s22 = sshll.u32 %s291_s21, 4  ;;  %s1718_s20 = scalar_lea.hbm %s1862_s1, %s1090_s16  ;;  %s300_s22 = int_to_ptr.vmem [resolvable:$true] %s299_s22 }
  0x6d   : > { %s1884_s12 = sand.u32 1, %s1499_s27   ;;  %s1359_s0 = scalar_lea.hbm %s1718_s20, 128 }
  0x6e   : > { %s288_s2 = scalar_lea.sflag [#allocation7], %s1884_s12  ;;  %p1360_p5 = scmp.ne.s32.totalorder %s1718_s20, %s1359_s0 }
  0x6f   : > { %s1364_s23 = scalar_lea.hbm %s1862_s1, 1536  ;;  %p1365_p2 = scmp.lt.u32.totalorder %s1718_s20, %s1862_s1 }
  0x70   : > { %p1362_p11 = pnand %p1360_p5, %p1331_p0  ;;  %p1366_p4 = scmp.lt.u32.totalorder %s1364_s23, %s1359_s0 }
  0x71   : > { %p1368_p13 = scmp.lt.u32.totalorder %s1359_s0, %s1718_s20 }
  0x72   : > { %p1363_p1 = pneg %p1362_p11  ;;  %p1367_p8 = por %p1366_p4, %p1365_p2 }
  0x74   : > { %p1369_p3 = por %p1368_p13, %p1367_p8 }
  0x76   : > { %p1370_p7 = pnand %p1369_p3, %p1363_p1 }
  0x78   : > { %1373 = shalt.err (!%p1370_p7)
}
  0x79   : > { %s1374_s16 = scalar_lea.vmem %s300_s22, 128  ;;  %s1508_s21 = smov [#allocation6]  }
  0x7a   : > { %p1375_p9 = scmp.ne.s32.totalorder %s300_s22, %s1374_s16  ;;  %s1379_s19 = sshll.u32 %s1508_s21, 4  ;;  %s1380_s19 = int_to_ptr.vmem [resolvable:$false] %s1379_s19 }
  0x7b   : > { %s1381_s12 = scalar_lea.vmem %s1380_s19, 256  ;;  %p1382_p11 = scmp.lt.s32.totalorder %s300_s22, %s1380_s19 }
  0x7c   : > { %p1377_p12 = pnand %p1375_p9, %p1331_p0  ;;  %p1383_p6 = scmp.lt.s32.totalorder %s1381_s12, %s1374_s16 }
  0x7e   : > { %p1378_p5 = pneg %p1377_p12  ;;  %p1384_p2 = por %p1383_p6, %p1382_p11 }
  0x80   : > { %p1385_p4 = pnand %p1384_p2, %p1378_p5 }
  0x82   : > { %1388 = shalt.err (!%p1385_p4)
}
  0x83   : > { %1151 = dma.hbm_to_vmem [thread:$0]  (!%p1683_p10), %s1718_s20, 128, %s300_s22, %s288_s2  }
  0x84   : > { %p1885_p1 = scmp.ne.s32.totalorder %s1877_s9, 0 }
  0x85   : > { %s1744_s0 = sand.u32 (!%p1885_p1), 1, %s1491_s25   ;;  %p1886_p6 = scmp.ne.s32.totalorder (!%p1885_p1), %s1875_s30, 0 }
  0x86   : > { %308 = sbr.rel (%p1885_p1) target bundleno = 694 (0x2b6), region = 44  ;;  %s1747_s14 = sshll.u32 (!%p1885_p1), %s1744_s0, 3 }
  0x87   : > { %s311_s11 = scalar_lea.sflag (!%p1885_p1), [#allocation4], %s1744_s0  ;;  %s314_s23 = scalar_lea.vmem (!%p1885_p1), [#allocation3], %s1747_s14 }
  0x8d   : > { %1462 = dma.done.wait (%p1886_p6), %s311_s11, 128  }
  0x8e   : > { %1464 = vsyncadd (%p1886_p6), %s311_s11, 4294967168  ;;  %s319_s9 = sand.u32 1, %s1572_s28   ;;  %s323_s22 = scalar_lea.vmem [#allocation6], %s1747_s14 }
  0x8f   : > { %s320_s29 = scalar_lea.sflag [#allocation7], %s319_s9 }
  0x90   : > { %1466 = dma.done.wait (%p1886_p6), %s320_s29, 128  }
  0x91   : > { %1468 = vsyncadd (%p1886_p6), %s320_s29, 4294967168  ;;  %p1887_p10 = scmp.eq.s32.totalorder %s1572_s28, 0 }
  0x93   : > { %1470 = dma.done.wait (%p1887_p10), [#allocation7], 4096   ;;  %p1888_p0 = pmov %p1887_p10 }
  0x95   : > { %1472 = vsyncadd (%p1888_p0), [#allocation7], 4294963200  ;;  %p1889_p8 = pmov %p1888_p0 }
  0x96   : > { %p1890_p13 = pmov %p1888_p0 }
  0x97   : > { %1474 = dma.done.wait (%p1889_p8), [#allocation10], 2048  }
  0x98   : > { %1476 = vsyncadd (%p1890_p13), [#allocation10], 4294965248  ;;  %v1203_v0 = vld [vmem:[#allocation8 + $0x4] ss:$8 sps:$4 sm:$0xff]   ;;  %v1205_v1 = vld [vmem:[#allocation8] ss:$8 sps:$4 sm:$0xff]   ;;  %v414_v52 = vlaneseq }
  0x99   : > { %591 = vmatprep.subr.bf16.mxu0 %v1203_v0  ;;  %v1206_v2 = vld [vmem:[#allocation8 + $0x14] ss:$8 sps:$4 sm:$0xff]   ;;  %v1208_v3 = vld [vmem:[#allocation8 + $0x10] ss:$8 sps:$4 sm:$0xff]   ;;  %v1209_v4 = vld [vmem:[#allocation8 + $0x24] ss:$8 sps:$4 sm:$0xff]  }
  0x9a   : > { %592 = vmatpush1.bf16.msra.mxu0 %v1205_v1  ;;  %v1211_v5 = vld [vmem:[#allocation8 + $0x20] ss:$8 sps:$4 sm:$0xff]   ;;  %v1212_v6 = vld [vmem:[#allocation8 + $0x34] ss:$8 sps:$4 sm:$0xff]   ;;  %v1214_v7 = vld [vmem:[#allocation8 + $0x30] ss:$8 sps:$4 sm:$0xff]  }
  0x9b   : > { %593 = vmatprep.subr.bf16.mxu0 %v1206_v2  ;;  %v1215_v8 = vld [vmem:[#allocation8 + $0x44] ss:$8 sps:$4 sm:$0xff]   ;;  %v1217_v9 = vld [vmem:[#allocation8 + $0x40] ss:$8 sps:$4 sm:$0xff]   ;;  %v1218_v10 = vld [vmem:[#allocation8 + $0x54] ss:$8 sps:$4 sm:$0xff]  }
  0x9c   : > { %v1220_v11 = vld [vmem:[#allocation8 + $0x50] ss:$8 sps:$4 sm:$0xff]   ;;  %v1221_v12 = vld [vmem:[#allocation8 + $0x64] ss:$8 sps:$4 sm:$0xff]   ;;  %v1223_v13 = vld [vmem:[#allocation8 + $0x60] ss:$8 sps:$4 sm:$0xff]  }
  0x9d   : > { %v376_v14 = vld [vmem:[%s323_s22] sm:$0xff]  ;;  %v1251_v17 = vld [vmem:[#allocation9 + $0x40] sm:$0xff]   ;;  %v1253_v19 = vld [vmem:[#allocation9 + $0x48] sm:$0xff]   ;;  %v415_v53 = vshrl.u32 %v414_v52, 7  ;;  %s1085_s2 = sshll.u32 %s1572_s28, 7  ;;  %s371_s10 = scalar_lea.vmem [#allocation12], %s1747_s14 }
  0x9e   : > { %594 = vmatpush1.bf16.msra.mxu0 %v1208_v3  ;;  %v1224_v15 = vld [vmem:[#allocation8 + $0x74] ss:$8 sps:$4 sm:$0xff]   ;;  %v1099_v16 = vpack.c.bf16 %v376_v14, %v376_v14  ;;  %v1252_v18 = vld [vmem:[#allocation9] sm:$0xff]   ;;  %v1226_v20 = vld [vmem:[#allocation8 + $0x70] ss:$8 sps:$4 sm:$0xff]   ;;  %1100 = vmatprep.subr.bf16.mxu1 %v1251_v17  ;;  %s869_s15 = sshll.u32 %s371_s10, 4  ;;  %s1783_s19 = scalar_lea.hbm %s1868_s7, %s1085_s2  ;;  %s1785_s15 = int_to_ptr.vmem [resolvable:$true] %s869_s15 }
  0x9f   : > { %595 = vmatprep.subr.bf16.mxu0 %v1209_v4  ;;  %1101 = vmatpush3.bf16.msra.mxu1 %v1252_v18  ;;  %v1254_v21 = vld [vmem:[#allocation9 + $0x8] sm:$0xff]   ;;  %v1255_v22 = vld [vmem:[#allocation9 + $0x50] sm:$0xff]   ;;  %v1257_v26 = vld [vmem:[#allocation9 + $0x58] sm:$0xff]   ;;  %v416_v54 = vsub.s32 0, %v415_v53  ;;  %v420_v56 = vsub.s32 1, %v415_v53  ;;  %s842_s12 = scalar_lea.sflag [#allocation13], %s1744_s0 }
  0xa0   : > { %623 = vmatprep.mubr.bf16.mxu0 %v1099_v16  ;;  %1102 = vmatprep.subr.bf16.mxu1 %v1253_v19  ;;  %v1227_v23 = vld [vmem:[#allocation8 + $0x84] ss:$8 sps:$4 sm:$0xff]   ;;  %v1229_v24 = vld [vmem:[#allocation8 + $0x80] ss:$8 sps:$4 sm:$0xff]   ;;  %v1256_v25 = vld [vmem:[#allocation9 + $0x10] sm:$0xff]   ;;  %s1389_s11 = scalar_lea.vmem %s1785_s15, 128 }
  0xa1   : > { %v1230_v27 = vld [vmem:[#allocation8 + $0x94] ss:$8 sps:$4 sm:$0xff]   ;;  %v1232_v28 = vld [vmem:[#allocation8 + $0x90] ss:$8 sps:$4 sm:$0xff]   ;;  %v1233_v30 = vld [vmem:[#allocation8 + $0xa4] ss:$8 sps:$4 sm:$0xff]   ;;  %p1390_p3 = scmp.ne.s32.totalorder %s1785_s15, %s1389_s11 }
  0xa2   : > { %596 = vmatpush1.bf16.msra.mxu0 %v1211_v5  ;;  %v1258_v29 = vld [vmem:[#allocation9 + $0x18] sm:$0xff]   ;;  %v1259_v31 = vld [vmem:[#allocation9 + $0x60] sm:$0xff]   ;;  %v1261_v34 = vld [vmem:[#allocation9 + $0x68] sm:$0xff]   ;;  %p1891_p7 = scmp.ne.s32.totalorder %s1881_s18, 0 }
  0xa3   : > { %597 = vmatprep.subr.bf16.mxu0 %v1212_v6  ;;  %1103 = vmatpush3.bf16.msra.mxu1 %v1254_v21  ;;  %v1260_v32 = vld [vmem:[#allocation9 + $0x20] sm:$0xff]   ;;  %v1236_v35 = vld [vmem:[#allocation8 + $0xb4] ss:$8 sps:$4 sm:$0xff]   ;;  %v1262_v36 = vld [vmem:[#allocation9 + $0x28] sm:$0xff]  }
  0xa4   : > { %1104 = vmatprep.subr.bf16.mxu1 %v1255_v22  ;;  %v1235_v33 = vld [vmem:[#allocation8 + $0xa0] ss:$8 sps:$4 sm:$0xff]   ;;  %v1238_v37 = vld [vmem:[#allocation8 + $0xb0] ss:$8 sps:$4 sm:$0xff]   ;;  %v1239_v38 = vld [vmem:[#allocation8 + $0xc4] ss:$8 sps:$4 sm:$0xff]   ;;  %p1391_p9 = pnand %p1390_p3, %p1891_p7 }
  0xa5   : > { %v1241_v39 = vld [vmem:[#allocation8 + $0xc0] ss:$8 sps:$4 sm:$0xff]   ;;  %v1242_v40 = vld [vmem:[#allocation8 + $0xd4] ss:$8 sps:$4 sm:$0xff]   ;;  %v1244_v41 = vld [vmem:[#allocation8 + $0xd0] ss:$8 sps:$4 sm:$0xff]  }
  0xa6   : > { %598 = vmatpush1.bf16.msra.mxu0 %v1214_v7  ;;  %v1245_v42 = vld [vmem:[#allocation8 + $0xe4] ss:$8 sps:$4 sm:$0xff]   ;;  %v1247_v43 = vld [vmem:[#allocation8 + $0xe0] ss:$8 sps:$4 sm:$0xff]   ;;  %v1248_v44 = vld [vmem:[#allocation8 + $0xf4] ss:$8 sps:$4 sm:$0xff]   ;;  %p1392_p12 = pneg %p1391_p9 }
  0xa7   : > { %599 = vmatprep.subr.bf16.mxu0 %v1215_v8  ;;  %1105 = vmatpush3.bf16.msra.mxu1 %v1256_v25  ;;  %v1250_v45 = vld [vmem:[#allocation8 + $0xf0] ss:$8 sps:$4 sm:$0xff]   ;;  %v373_v46 = vld [vmem:[%s314_s23] sm:$0xff]  ;;  %s1509_s23 = smov [#allocation12]  }
  0xa8   : > { %1106 = vmatprep.subr.bf16.mxu1 %v1257_v26  ;;  %v1098_v47 = vpack.c.bf16 %v373_v46, %v373_v46  ;;  %v1263_v48 = vld [vmem:[#allocation9 + $0x70] sm:$0xff]   ;;  %v1265_v50 = vld [vmem:[#allocation9 + $0x78] sm:$0xff]   ;;  %v412_v55 = vld [vmem:[%s1864_s3] sm:$0x3]  ;;  %s1393_s9 = sshll.u32 %s1509_s23, 4  ;;  %s1394_s9 = int_to_ptr.vmem [resolvable:$false] %s1393_s9 }
  0xa9   : > { %v1264_v49 = vld [vmem:[#allocation9 + $0x30] sm:$0xff]   ;;  %v1266_v51 = vld [vmem:[#allocation9 + $0x38] sm:$0xff]   ;;  %v417_v57 = vrot.slane %v412_v55, %v416_v54  ;;  %v421_v58 = vrot.slane %v412_v55, %v420_v56  ;;  %s1395_s29 = scalar_lea.vmem %s1394_s9, 256  ;;  %p1396_p5 = scmp.lt.s32.totalorder %s1785_s15, %s1394_s9 }
  0xaa   : > { %600 = vmatpush1.bf16.msra.mxu0 %v1217_v9  ;;  %p1397_p11 = scmp.lt.s32.totalorder %s1395_s29, %s1389_s11 }
  0xab   : > { %601 = vmatprep.subr.bf16.mxu0 %v1218_v10  ;;  %1107 = vmatpush3.bf16.msra.mxu1 %v1258_v29 }
  0xac   : > { %1108 = vmatprep.subr.bf16.mxu1 %v1259_v31  ;;  %p1398_p2 = por %p1397_p11, %p1396_p5 }
  0xae   : > { %602 = vmatpush1.bf16.msra.mxu0 %v1220_v11  ;;  %p1399_p4 = pnand %p1398_p2, %p1392_p12 }
  0xaf   : > { %603 = vmatprep.subr.bf16.mxu0 %v1221_v12  ;;  %1109 = vmatpush3.bf16.msra.mxu1 %v1260_v32 }
  0xb0   : > { %1110 = vmatprep.subr.bf16.mxu1 %v1261_v34 }
  0xb2   : > { %604 = vmatpush1.bf16.msra.mxu0 %v1223_v13 }
  0xb3   : > { %605 = vmatprep.subr.bf16.mxu0 %v1224_v15  ;;  %1111 = vmatpush3.bf16.msra.mxu1 %v1262_v36 }
  0xb4   : > { %1112 = vmatprep.subr.bf16.mxu1 %v1263_v48 }
  0xb6   : > { %606 = vmatpush1.bf16.msra.mxu0 %v1226_v20 }
  0xb7   : > { %607 = vmatprep.subr.bf16.mxu0 %v1227_v23  ;;  %1113 = vmatpush3.bf16.msra.mxu1 %v1264_v49 }
  0xb8   : > { %1114 = vmatprep.subr.bf16.mxu1 %v1265_v50 }
  0xba   : > { %608 = vmatpush1.bf16.msra.mxu0 %v1229_v24 }
  0xbb   : > { %609 = vmatprep.subr.bf16.mxu0 %v1230_v27  ;;  %1115 = vmatpush3.bf16.msra.mxu1 %v1266_v51 }
  0xbe   : > { %610 = vmatpush1.bf16.msra.mxu0 %v1232_v28 }
  0xbf   : > { %611 = vmatprep.subr.bf16.mxu0 %v1233_v30 }
  0xc2   : > { %612 = vmatpush1.bf16.msra.mxu0 %v1235_v33 }
  0xc3   : > { %613 = vmatprep.subr.bf16.mxu0 %v1236_v35 }
  0xc6   : > { %614 = vmatpush1.bf16.msra.mxu0 %v1238_v37 }
  0xc7   : > { %615 = vmatprep.subr.bf16.mxu0 %v1239_v38 }
  0xca   : > { %616 = vmatpush1.bf16.msra.mxu0 %v1241_v39 }
  0xcb   : > { %617 = vmatprep.subr.bf16.mxu0 %v1242_v40 }
  0xce   : > { %618 = vmatpush1.bf16.msra.mxu0 %v1244_v41 }
  0xcf   : > { %619 = vmatprep.subr.bf16.mxu0 %v1245_v42 }
  0xd2   : > { %620 = vmatpush1.bf16.msra.mxu0 %v1247_v43 }
  0xd3   : > { %621 = vmatprep.subr.bf16.mxu0 %v1248_v44 }
  0xd6   : > { %622 = vmatpush1.bf16.msra.mxu0 %v1250_v45 }
  0xd9   : > { %624 = vmatmul.mubr.bf16.vlgmr.msra.gmra.mrb[0].mxu0 %v1098_v47 }
 0x1ac   : > { %v625_v59 = vpop.f32.mrb[0].mxu0 }
 0x1ad   : > { %v626_v60 = vadd.f32 %v625_v59, %v417_v57  ;;  %v627_v61 = vpop.f32.mrb[1].mxu0 }
 0x1ae   : > { %v628_v62 = vadd.f32 %v627_v61, %v421_v58  ;;  %v629_v63 = vpop.f32.mrb[2].mxu0 }
 0x1af   : > { %v630_v0 = vpop.f32.mrb[3].mxu0  ;;  %v632_v1 = vmul.f32 %v626_v60, %v626_v60  ;;  %v650_v2 = vmax.f32 %v626_v60, 0.0 }
 0x1b0   : > { %v633_v3 = vmul.f32 %v628_v62, %v628_v62  ;;  %v651_v4 = vmax.f32 %v628_v62, 0.0 }
 0x1b1   : > { %v652_v7 = vpack.c.bf16 %v650_v2, %v650_v2 }
 0x1b2   : > { %v634_v5 = vadd.f32 %v633_v3, %v632_v1  ;;  %v653_v6 = vpack.c.bf16 %v651_v4, %v651_v4 }
 0x1b4   : > { %635 = vadd.xlane.f32.xlu0 %v634_v5  ;;  %821 = vmatprep.mubr.bf16.mxu1 %v653_v6 }
 0x1b5   : > { %822 = vmatmul.mubr.bf16.vlgmr.msra.gmra.mrb[0].mxu1 %v652_v7 }
 0x241   : > { %v636_v8 = vpop.xlane.xlu0 %635 }
 0x242   : > { %v637_v9 = vmax.f32 %v636_v8, 1e-24 }
 0x244   : > { %1267 = vrsqrt.f32 %v637_v9 }
 0x24e   : > { %v1268_v10 = vpop.eup %1267 }
 0x24f   : > { %v639_v11 = vmul.f32 %v1268_v10, %v626_v60  ;;  %v640_v12 = vmul.f32 %v1268_v10, %v628_v62 }
 0x251   : > { %v1091_v13 = vpack.c.bf16 %v640_v12, %v639_v11 }
 0x253   : > { %649 = vst [vmem:[%s371_s10] sm:$0xff] %v1091_v13 }
 0x254   : > { %1402 = shalt.err (!%p1399_p4)
}
 0x255   : > { %s1403_s22 = scalar_lea.hbm %s1783_s19, 128  ;;  %s1407_s10 = scalar_lea.hbm %s1868_s7, 384 }
 0x256   : > { %p1404_p1 = scmp.ne.s32.totalorder %s1783_s19, %s1403_s22  ;;  %p1408_p0 = scmp.lt.u32.totalorder %s1783_s19, %s1868_s7 }
 0x257   : > { %p1409_p8 = scmp.lt.u32.totalorder %s1407_s10, %s1403_s22  ;;  %p1411_p3 = scmp.lt.u32.totalorder %s1403_s22, %s1783_s19 }
 0x258   : > { %p1405_p6 = pnand %p1404_p1, %p1891_p7 }
 0x259   : > { %p1410_p13 = por %p1409_p8, %p1408_p0 }
 0x25a   : > { %p1406_p10 = pneg %p1405_p6 }
 0x25b   : > { %p1412_p9 = por %p1411_p3, %p1410_p13 }
 0x25d   : > { %p1413_p12 = pnand %p1412_p9, %p1406_p10 }
 0x25f   : > { %1416 = shalt.err (!%p1413_p12)
}
 0x260   : > { %1135 = dma.vmem_to_hbm [thread:$0]  (%p1891_p7), %s1785_s15, 128, %s1783_s19, %s842_s12   ;;  %v1065_v15 = vld [vmem:[%s1866_s5] ss:$0 sm:$0xff] }
 0x261   : > { %s364_s9 = scalar_lea.vmem [#allocation11], %s1747_s14  ;;  %s1818_s12 = scalar_lea.hbm %s1867_s6, %s1085_s2 }
 0x262   : > { %s855_s29 = sshll.u32 %s364_s9, 4  ;;  %s837_s22 = scalar_lea.sflag [#allocation5], %s1744_s0  ;;  %s1820_s29 = int_to_ptr.vmem [resolvable:$true] %s855_s29 }
 0x263   : > { %s1417_s30 = scalar_lea.vmem %s1820_s29, 128  ;;  %s1510_s14 = smov [#allocation11]  }
 0x264   : > { %p1418_p5 = scmp.ne.s32.totalorder %s1820_s29, %s1417_s30  ;;  %s1421_s28 = sshll.u32 %s1510_s14, 4  ;;  %s1422_s28 = int_to_ptr.vmem [resolvable:$false] %s1421_s28 }
 0x265   : > { %s1423_s20 = scalar_lea.vmem %s1422_s28, 256  ;;  %p1424_p4 = scmp.lt.s32.totalorder %s1820_s29, %s1422_s28 }
 0x266   : > { %p1419_p11 = pnand %p1418_p5, %p1891_p7  ;;  %p1425_p1 = scmp.lt.s32.totalorder %s1423_s20, %s1417_s30 }
 0x268   : > { %p1420_p2 = pneg %p1419_p11  ;;  %p1426_p6 = por %p1425_p1, %p1424_p4 }
 0x26a   : > { %p1427_p10 = pnand %p1426_p6, %p1420_p2 }
 0x288   : > { %v1116_v14 = vpop.f32.mrb[0].mxu1 }
 0x289   : > { %v1117_v16 = vpop.f32.mrb[1].mxu1 }
 0x28a   : > { %v1118_v17 = vadd.f32 %v1117_v16, %v1116_v14  ;;  %v1119_v18 = vpop.f32.mrb[2].mxu1 }
 0x28b   : > { %v1120_v19 = vpop.f32.mrb[3].mxu1 }
 0x28c   : > { %v824_v20 = vadd.f32 %v1118_v17, %v1065_v15 }
 0x28e   : > { %v1082_v21 = vmul.f32 -1.442695, %v824_v20 }
 0x290   : > { %1269 = vpow2.f32 %v1082_v21 }
 0x29a   : > { %v1270_v22 = vpop.eup %1269 }
 0x29b   : > { %v832_v23 = vadd.f32 1.0, %v1270_v22 }
 0x29d   : > { %1271 = vrcp.f32 %v832_v23 }
 0x2a7   : > { %v1272_v24 = vpop.eup %1271 }
 0x2a8   : > { %835 = vst [vmem:[%s364_s9] sm:$0xff] %v1272_v24 }
 0x2a9   : > { %1430 = shalt.err (!%p1427_p10)
}
 0x2aa   : > { %s1431_s0 = scalar_lea.hbm %s1818_s12, 128  ;;  %s1435_s16 = scalar_lea.hbm %s1867_s6, 384 }
 0x2ab   : > { %p1432_p0 = scmp.ne.s32.totalorder %s1818_s12, %s1431_s0  ;;  %p1436_p3 = scmp.lt.u32.totalorder %s1818_s12, %s1867_s6 }
 0x2ac   : > { %p1437_p9 = scmp.lt.u32.totalorder %s1435_s16, %s1431_s0  ;;  %p1439_p5 = scmp.lt.u32.totalorder %s1431_s0, %s1818_s12 }
 0x2ad   : > { %p1433_p8 = pnand %p1432_p0, %p1891_p7 }
 0x2ae   : > { %p1438_p12 = por %p1437_p9, %p1436_p3 }
 0x2af   : > { %p1434_p13 = pneg %p1433_p8 }
 0x2b0   : > { %p1440_p11 = por %p1439_p5, %p1438_p12 }
 0x2b2   : > { %p1441_p2 = pnand %p1440_p11, %p1434_p13 }
 0x2b4   : > { %1444 = shalt.err (!%p1441_p2)
}
 0x2b5   : > { %1134 = dma.vmem_to_hbm [thread:$0]  (%p1891_p7), %s1820_s29, 128, %s1818_s12, %s837_s22  }
 0x2b6 PF: > { %p1164_p4 = scmp.ge.s32.totalorder %s1499_s27, 2  ;;  %s881_s23 = sand.u32 1, %s1487_s24  }
 0x2b7   : > { %p1892_p1 = scmp.ne.s32.totalorder %s1876_s8, 0  ;;  %s882_s9 = scalar_lea.sflag [#allocation5], %s881_s23 }
 0x2b9   : > { %p1153_p6 = pnand %p1164_p4, %p1892_p1 }
 0x2bb   : > { %1478 = dma.done.wait (!%p1153_p6), %s882_s9, 128  }
 0x2bc   : > { %1480 = vsyncadd (!%p1153_p6), %s882_s9, 4294967168  ;;  %s891_s15 = scalar_lea.sflag [#allocation13], %s881_s23 }
 0x2bd   : > { %1482 = dma.done.wait (!%p1153_p6), %s891_s15, 128  }
 0x2be   : > { %1484 = vsyncadd (!%p1153_p6), %s891_s15, 4294967168  ;;  %p28_p7 = scmp.ge.s32.totalorder %s1653_s13, 5   ;;  %s1893_s24 = smov %s1491_s25 }
 0x2bf   : > { %s1894_s25 = smov %s1495_s26  ;;  %s1895_s26 = smov %s1662_s17 }
 0x2c0   : > { %s1896_s27 = smov %s1653_s13  ;;  %30 = sbr.rel (!%p28_p7) target bundleno = 13 (0xd), region = 127 }
 0x2c7   :  { %896 = vsyncpa [#allocation4], 1 }
 0x2c8   :  { %898 = vsyncpa [#allocation4 + $0x1], 1 }
 0x2c9   :  { %899 = vsyncpa [#allocation7], 1 }
 0x2ca   :  { %901 = vsyncpa [#allocation7 + $0x1], 1 }
 0x2cb   :  { %902 = vsyncpa [#allocation10], 1 }
 0x2cc   :  { %903 = vsyncpa [#allocation5], 1 }
 0x2cd   :  { %905 = vsyncpa [#allocation5 + $0x1], 1 }
 0x2ce   :  { %906 = vsyncpa [#allocation13], 1 }
 0x2cf   :  { %908 = vsyncpa [#allocation13 + $0x1], 1 }

</bundles_post_ra>
